<compile_context>
chip_gen: v7x
topology: tpu7x:2x2x1
jax: 0.10.0
libtpu: 0.0.40
codegen_flags: <defaults>
</compile_context>

<pallas_src>
import functools

import jax
import jax.numpy as jnp
from jax.experimental import pallas as pl
from jax.experimental.pallas import tpu as pltpu

LANE = 128        # output last-dim padded to this -> unmasked vst
SUBLANE = 8       # f32 sublane granularity
MAX_TILE_B = 1024  # batch tile cap, sized for v7x's 64 MiB VMEM w/ headroom


def _round_up(n: int, m: int) -> int:
    return ((n + m - 1) // m) * m


def neuralnet2_kernel(x_ref, w_ref, o_ref):
    # Single MXU push. Bias is folded into the last live row of w_ref and is
    # picked up by the ones column appended to x in the wrapper, so there is
    # no bias operand and no VPU broadcast-add.
    o_ref[...] = jnp.dot(
        x_ref[...], w_ref[...], preferred_element_type=jnp.float32
    ).astype(o_ref.dtype)


def prepare_params(w1, b1, w2, b2, *, param_dtype=jnp.float32):
    """One-time layout prep (done at init, NOT per forward call).

    w1/b1 are parameters of the module but are dead in its forward(); they are
    never shipped to the kernel.  Returns (w_aug, in_features, num_classes):
    w_aug has shape (K_pad, C_pad) with
      rows [0, H)        = w2.T            (H = hidden == input features)
      row  H             = b2              (matched by ones column in x)
      rows (H, K_pad)    = 0               (K padded to a sublane multiple)
      cols [C, C_pad)    = 0               (C padded to 128 -> lane-dense out)
    """
    del w1, b1  # dead in forward(); intentionally not passed to the kernel
    w2 = jnp.asarray(w2, param_dtype)   # (C, H), PyTorch layout
    b2 = jnp.asarray(b2, param_dtype)   # (C,)
    num_classes, hidden = w2.shape
    k_pad = _round_up(hidden + 1, SUBLANE)
    c_pad = _round_up(max(num_classes, LANE), LANE)
    w_aug = jnp.zeros((k_pad, c_pad), param_dtype)
    w_aug = w_aug.at[:hidden, :num_classes].set(w2.T)
    w_aug = w_aug.at[hidden, :num_classes].set(b2)
    return w_aug, hidden, num_classes


@functools.partial(jax.jit, static_argnames=("in_features", "num_classes"))
def neuralnet2_forward(x, w_aug, *, in_features, num_classes):
    """x: (B, F) with F == hidden_size; w_aug: (K_pad, C_pad). Returns (B, C)."""
    B, F = x.shape
    assert F == in_features, (
        "reference forward applies linear2 directly to x => F must equal H"
    )
    k_pad, c_pad = w_aug.shape
    itemsize = jnp.dtype(x.dtype).itemsize

    # Batch tiling: one grid axis over rows, marked "parallel" (megacore).
    tile_b = min(MAX_TILE_B, _round_up(B, SUBLANE))
    b_pad = _round_up(B, tile_b)

    # Augment x: ones column at index F picks up the bias row of w_aug; zero
    # pad rows/cols to (b_pad, k_pad).  Cheap wrapper-side XLA pad; fuses.
    x_aug = jnp.zeros((b_pad, k_pad), x.dtype)
    x_aug = x_aug.at[:B, :F].set(x)
    x_aug = x_aug.at[:B, F].set(jnp.asarray(1.0, x.dtype))

    cost = pl.CostEstimate(
        flops=2 * b_pad * k_pad * c_pad,
        transcendentals=0,
        bytes_accessed=itemsize * (b_pad * k_pad + k_pad * c_pad + b_pad * c_pad),
    )

    out = pl.pallas_call(
        neuralnet2_kernel,
        out_shape=jax.ShapeDtypeStruct((b_pad, c_pad), x.dtype),
        grid_spec=pltpu.PrefetchScalarGridSpec(
            num_scalar_prefetch=0,
            grid=(b_pad // tile_b,),
            in_specs=[
                # x/out stream with the batch tile (auto double-buffered).
                pl.BlockSpec((tile_b, k_pad), lambda i: (i, 0)),
                # Weights: same block every step -> DMA'd once, VMEM-resident.
                pl.BlockSpec((k_pad, c_pad), lambda i: (0, 0)),
            ],
            out_specs=pl.BlockSpec((tile_b, c_pad), lambda i: (i, 0)),
        ),
        compiler_params=pltpu.CompilerParams(
            dimension_semantics=("parallel",),
        ),
        cost_estimate=cost,
    )(x_aug, w_aug)

    # TODO(synk): for repeated tiny-batch calls (token-by-token inference),
    # move weights to a cross-call resident pattern (P10 / pl.get_global)
    # instead of re-DMA'ing the 20 KiB w_aug every call.
    return out[:B, :num_classes]


if __name__ == "__main__":
    # Shapes implied by the module: input_size == hidden_size (see note above).
    batch = 8            # >= 8 rows -> full f32 sublane occupancy
    input_size = 32
    hidden_size = 32
    num_classes = 8

    key = jax.random.PRNGKey(0)
    kx, kw1, kb1, kw2, kb2 = jax.random.split(key, 5)

    x = jax.random.normal(kx, (batch, input_size), dtype=jnp.float32)

    # Deterministic parameter init (PyTorch-shaped: (out_features, in_features)).
    bound1 = 1.0 / (input_size ** 0.5)
    w1 = jax.random.uniform(kw1, (hidden_size, input_size), jnp.float32, -bound1, bound1)
    b1 = jax.random.uniform(kb1, (hidden_size,), jnp.float32, -bound1, bound1)
    bound2 = 1.0 / (hidden_size ** 0.5)
    w2 = jax.random.uniform(kw2, (num_classes, hidden_size), jnp.float32, -bound2, bound2)
    b2 = jax.random.uniform(kb2, (num_classes,), jnp.float32, -bound2, bound2)

    # One-time layout prep (amortized across all forward calls).
    w_aug, in_features, n_cls = prepare_params(w1, b1, w2, b2)
    w_aug = jax.block_until_ready(w_aug)

    out = neuralnet2_forward(x, w_aug, in_features=in_features, num_classes=n_cls)
    out = jax.block_until_ready(out)

    # Reference (plain JAX) for the semantics of the PyTorch forward: linear2(x).
    ref = x @ w2.T + b2
    assert out.shape == (batch, num_classes)
    assert jnp.allclose(out, ref, atol=1e-5, rtol=1e-5), "mismatch vs reference"

    print("KERNEL_OK")
</pallas_src>

<mosaic_0001>
module attributes {stable_mosaic.version = 11 : i64} {
  func.func @neuralnet2_kernel(%arg0: i32, %arg1: memref<8x40xf32, #tpu.memory_space<vmem>>, %arg2: memref<40x128xf32, #tpu.memory_space<vmem>>, %arg3: memref<8x128xf32, #tpu.memory_space<vmem>>) attributes {dimension_semantics = [#tpu.dimension_semantics<parallel>], iteration_bounds = array<i64: 1>, scalar_prefetch = 0 : i64, scratch_operands = 0 : i64, tpu.core_type = #tpu.core_type<tc>, window_params = [{transform_indices = @transform_0, window_bounds = array<i64: 8, 40>}, {pipeline_mode = #tpu.pipeline_mode<synchronous>, transform_indices = @transform_1, window_bounds = array<i64: 40, 128>}, {transform_indices = @transform_2, window_bounds = array<i64: 8, 128>}]} {
    %c0 = arith.constant 0 : index
    %c0_0 = arith.constant 0 : index
    %0 = vector.load %arg1[%c0, %c0_0] : memref<8x40xf32, #tpu.memory_space<vmem>>, vector<8x40xf32>
    %c0_1 = arith.constant 0 : index
    %c0_2 = arith.constant 0 : index
    %1 = vector.load %arg2[%c0_1, %c0_2] : memref<40x128xf32, #tpu.memory_space<vmem>>, vector<40x128xf32>
    %cst = arith.constant dense<0.000000e+00> : vector<8x128xf32>
    %2 = tpu.matmul %0, %1, %cst {dimension_numbers = #tpu.dot_dimension_numbers<[1], [0], [0], [1], [0, 0, 1, 1], [], []>} : vector<8x40xf32>, vector<40x128xf32>, vector<8x128xf32> -> vector<8x128xf32>
    %c0_3 = arith.constant 0 : index
    %c0_4 = arith.constant 0 : index
    %3 = vector.load %arg3[%c0_3, %c0_4] : memref<8x128xf32, #tpu.memory_space<vmem>>, vector<8x128xf32>
    tpu.vector_store %arg3[%c0_3, %c0_4], %2 {strides = array<i32>} : memref<8x128xf32, #tpu.memory_space<vmem>>, vector<8x128xf32>,
    return
  }
  func.func @transform_0(%arg0: i32) -> (i32, i32) {
    %c0_i32 = arith.constant 0 : i32
    %c0_i32_0 = arith.constant 0 : i32
    return %arg0, %c0_i32 : i32, i32
  }
  func.func @transform_1(%arg0: i32) -> (i32, i32) {
    %c0_i32 = arith.constant 0 : i32
    %c0_i32_0 = arith.constant 0 : i32
    %c0_i32_1 = arith.constant 0 : i32
    return %c0_i32, %c0_i32_0 : i32, i32
  }
  func.func @transform_2(%arg0: i32) -> (i32, i32) {
    %c0_i32 = arith.constant 0 : i32
    %c0_i32_0 = arith.constant 0 : i32
    return %arg0, %c0_i32 : i32, i32
  }
}

</mosaic_0001>

<bundles_post_ra>
// kernel: neuralnet2_forward.1
= control target key start
LH: loop header
LB: loop body
LE: loop exit
PB: predicated region body
PF: predicated region fallthrough
CT: control target
= control target key end

     0   :  { %v161_v3 = vmov 0.0|0.0   ;;  %vm162_vm0 = vmmov 0   ;;  %v163_v6 = vmov 0.0   ;;  %s210_s0 = inlined_call_operand.vmem [shape: f32[8,40], index: 0, kind: input, shape index: {}]   ;;  %s211_s1 = inlined_call_operand.vmem [shape: f32[40,128], index: 1, kind: input, shape index: {}]   ;;  %s212_s2 = inlined_call_operand.hbm [shape: f32[8,128], index: 2, kind: output, shape index: {}]  }
   0x1   :  { %v13_v0 = vld [vmem:[%s211_s1] sm:$0xff]  ;;  %v14_v1 = vld [vmem:[%s211_s1 + $0x8] sm:$0xff]  ;;  %v15_v2 = vld [vmem:[%s211_s1 + $0x10] sm:$0xff]  ;;  %127 = vmatprep.subr.bf16.mxu0 %v161_v3  ;;  %124 = vmatprep.mubr.msk.f32.mxu0 %vm162_vm0, %v163_v6 }
   0x2   :  { %v128_v4 = vpack.c.bf16 %v14_v1, %v13_v0  ;;  %v16_v5 = vld [vmem:[%s211_s1 + $0x18] sm:$0xff] }
   0x3   :  { %7 = vsyncpa [#allocation3], 0  ;;  %v131_v7 = vpack.c.bf16 %v16_v5, %v15_v2  ;;  %v17_v8 = vld [vmem:[%s211_s1 + $0x20] sm:$0xff]  ;;  %vm18_vm1 = vcmask 326656   ;;  %s164_s21 = smov [#allocation2]  }
   0x4   :  { %129 = vmatpush3.bf16.msra.mxu0 %v128_v4  ;;  %v12_v9 = vld [vmem:[%s210_s0] sm:$0xff]  ;;  %s99_s22 = sshll.u32 %s164_s21, 4  ;;  %s100_s22 = int_to_ptr.vmem [resolvable:$true] %s99_s22 }
   0x5   :  { %130 = vmatprep.subr.bf16.mxu0 %v161_v3  ;;  %s137_s23 = scalar_lea.vmem %s100_s22, 128  ;;  %p142_p1 = scmp.lt.s32.totalorder %s100_s22, %s100_s22 }
   0x6   :  { %p138_p0 = scmp.ne.s32.totalorder %s100_s22, %s137_s23  ;;  %p143_p2 = scmp.lt.s32.totalorder %s137_s23, %s137_s23 }
   0x8   :  { %132 = vmatpush3.bf16.msra.mxu0 %v131_v7  ;;  %p144_p3 = por %p143_p2, %p142_p1 }
   0x9   :  { %122 = vmatprep.subr.mxu0 %v163_v6 }
   0xa   :  { %p145_p4 = pnand %p144_p3, %p138_p0 }
   0xc   :  { %123 = vmatpush3.msra.mxu0 %v17_v8 }
   0xd   :  { %125 = vmatmul.mubr.msk.f32.vlgmr.msra.gmra.mrb[0].mxu0 %vm18_vm1, %v12_v9 }
  0xe0   :  { %v88_v10 = vpop.f32.mrb[0].mxu0 }
  0xe1   :  { %92 = vst [vmem:[#allocation2] sm:$0xff] %v88_v10  ;;  %v126_v11 = vpop.f32.mrb[1].mxu0 }
  0xe2   :  { %148 = shalt.err (!%p145_p4)
}
  0xe3   :  { %s149_s0 = scalar_lea.hbm %s212_s2, 128 }
  0xe4   :  { %p150_p5 = scmp.ne.s32.totalorder %s212_s2, %s149_s0  ;;  %p153_p6 = scmp.lt.u32.totalorder %s149_s0, %s212_s2 }
  0xe6   :  { %p155_p7 = pnand %p153_p6, %p150_p5 }
  0xe8   :  { %158 = shalt.err (!%p155_p7)
}
  0xe9   :  { %102 = dma.vmem_to_hbm [thread:$0]  %s100_s22, 128, %s212_s2, [#allocation3]  }
  0xea   :  { %159 = dma.done.wait [#allocation3], 128  }
  0xeb   :  { %160 = vsyncadd [#allocation3], 4294967168 }
  0xec   :  { %106 = vsyncpa [#allocation3], 1 }

</bundles_post_ra>
